<compile_context>
chip_gen: v7x
topology: tpu7x:2x2x1
jax: 0.10.0
libtpu: 0.0.40
codegen_flags: <defaults>
</compile_context>

<pallas_src>
import functools

import jax
import jax.numpy as jnp
from jax.experimental import pallas as pl
from jax.experimental.pallas import tpu as pltpu


def _joints_mse_partial_kernel(pred_ref, gt_ref, w_ref, out_ref, *,
                               rows_total, tr, hw):
    """One grid step: rows [i*tr, (i+1)*tr) of the flattened (B*J, HW) tensors.

    pred_ref/gt_ref: (tr, hw); w_ref: (tr, 1); out_ref: (8, 128) folded partial.
    """
    i = pl.program_id(0)

    n_full = hw // 128
    rem = hw - n_full * 128

    # Accumulate unweighted squared differences chunk-by-chunk.  Keeps data in
    # vregs between vld and VPU; no (tr, hw) f32 temporaries.
    p = jnp.zeros((tr, 128), jnp.float32)
    for c in range(n_full):
        lo = c * 128
        d = (pred_ref[:, lo:lo + 128].astype(jnp.float32)
             - gt_ref[:, lo:lo + 128].astype(jnp.float32))
        p = p + d * d

    if rem:
        # Rare tail (HW % 128 != 0): reduce the sub-128 chunk once and deposit
        # it into lane 0 of the partial.
        tp = pred_ref[:, n_full * 128:].astype(jnp.float32)
        tg = gt_ref[:, n_full * 128:].astype(jnp.float32)
        td = tp - tg
        tsum = jnp.sum(td * td, axis=1, keepdims=True)            # (tr, 1)
        lane = jax.lax.broadcasted_iota(jnp.int32, (tr, 128), 1)
        p = p + jnp.where(lane == 0, tsum, 0.0)

    # Per-row weight applied once on the small partial (w^2 since both pred
    # and gt are scaled by w in the reference).
    w = w_ref[...].astype(jnp.float32)                            # (tr, 1)
    p = p * (w * w)

    # Ragged last tile: select-zero OOB rows on the partial only (select-based
    # so garbage NaN/Inf in padded rows cannot leak).
    if rows_total % tr != 0:
        row_ids = i * tr + jax.lax.broadcasted_iota(jnp.int32, (tr, 1), 0)
        p = jnp.where(row_ids < rows_total, p, 0.0)

    # Fold (tr, 128) -> (8, 128) with sublane-group (VPU) adds before writeback.
    if tr == 8:
        out_ref[...] = p
    else:
        out_ref[...] = jnp.sum(p.reshape(tr // 8, 8, 128), axis=0)


def joints_mse_loss(output, target, target_weight, use_target_weight=True,
                    effective_num_joints=None, force_pallas=False):
    """output/target: (B, J, H, W). target_weight: (B, J). Returns scalar loss."""
    B, J, H, W = output.shape
    HW = H * W
    R = B * J
    eff_joints = J if effective_num_joints is None else effective_num_joints
    scale = 1.0 / (float(B * HW) * float(eff_joints))

    # Free, contiguous reshapes -- no transposes, no extra HBM copies.
    pred = output.reshape(R, HW)
    gt = target.reshape(R, HW)
    if use_target_weight:
        w = target_weight.reshape(R, 1).astype(output.dtype)
    else:
        w = jnp.ones((R, 1), dtype=output.dtype)

    itemsize = jnp.dtype(output.dtype).itemsize

    # Small-problem fallback: below ~256 KiB of input the fixed pallas_call
    # launch + separate epilogue dominate; a fused XLA reduction is faster.
    if not force_pallas and 2 * R * HW * itemsize < 256 * 1024:
        d = (pred.astype(jnp.float32) - gt.astype(jnp.float32)) * w.astype(jnp.float32)
        return jnp.sum(d * d) * scale

    # Row tile: multiple of 8 sublanes, ~4 MiB per input block (HBM-roofline
    # friendly; 2 inputs x 2 buffers = 16 MiB double-buffered), capped at the
    # sublane-padded row count.
    bytes_per_row = HW * itemsize
    tr = max(8, ((4 * 1024 * 1024) // max(bytes_per_row, 1)) // 8 * 8)
    rows_padded = ((R + 7) // 8) * 8
    tr = min(tr, rows_padded)
    # Guarantee >= 2 grid tiles when possible so the "parallel" grid axis can
    # be sharded across both v7x TensorCores (harmless elsewhere).
    if rows_padded >= 16:
        half = ((rows_padded // 2) + 7) // 8 * 8
        tr = min(tr, half)
    n_tiles = pl.cdiv(R, tr)

    kernel = functools.partial(
        _joints_mse_partial_kernel, rows_total=R, tr=tr, hw=HW)

    partials = pl.pallas_call(
        kernel,
        out_shape=jax.ShapeDtypeStruct((n_tiles * 8, 128), jnp.float32),
        grid_spec=pltpu.PrefetchScalarGridSpec(
            num_scalar_prefetch=0,
            grid=(n_tiles,),
            in_specs=[
                pl.BlockSpec((tr, HW), lambda i: (i, 0)),
                pl.BlockSpec((tr, HW), lambda i: (i, 0)),
                pl.BlockSpec((tr, 1), lambda i: (i, 0)),
            ],
            out_specs=pl.BlockSpec((8, 128), lambda i: (i, 0)),
        ),
        compiler_params=pltpu.CompilerParams(
            dimension_semantics=("parallel",),      # independent tiles -> megacore OK
            vmem_limit_bytes=40 * 1024 * 1024,      # safe on v5e/v6e/v7x
        ),
    )(pred, gt, w)

    # Tiny final reduction + single fused constant scale in plain JAX.
    return jnp.sum(partials) * scale


def _reference_loss(output, target, target_weight, use_target_weight=True,
                    effective_num_joints=None):
    """Pure-JAX mirror of the PyTorch per-joint loop (spec has no 0.5 factor)."""
    B, J, H, W = output.shape
    if effective_num_joints is None:
        effective_num_joints = J
    pred = output.reshape(B, J, -1)
    gt = target.reshape(B, J, -1)
    loss = 0.0
    for idx in range(J):
        hp = pred[:, idx, :]
        hg = gt[:, idx, :]
        if use_target_weight:
            wj = target_weight[:, idx][:, None]
            hp = hp * wj
            hg = hg * wj
        loss = loss + jnp.mean((hp - hg) ** 2)
    return loss / effective_num_joints


if __name__ == "__main__":
    key = jax.random.PRNGKey(0)
    k1, k2, k3 = jax.random.split(key, 3)

    # Primary (small) demo, shapes consistent with the module.
    B, J, H, W = 2, 4, 16, 16
    output = jax.random.normal(k1, (B, J, H, W), dtype=jnp.float32)
    target = jax.random.normal(k2, (B, J, H, W), dtype=jnp.float32)
    target_weight = jax.random.uniform(k3, (B, J), dtype=jnp.float32)

    # force_pallas=True so the Pallas kernel itself is exercised (this demo is
    # below the small-problem fallback threshold).
    loss = joints_mse_loss(output, target, target_weight,
                           use_target_weight=True, force_pallas=True)
    loss = jax.block_until_ready(loss)
    ref = _reference_loss(output, target, target_weight, use_target_weight=True)
    assert jnp.allclose(loss, ref, rtol=1e-5, atol=1e-6), (float(loss), float(ref))

    # Extra check: ragged rows (R % tile != 0) and HW % 128 != 0 (tail path).
    B2, J2, H2, W2 = 3, 5, 12, 12
    o2 = jax.random.normal(k1, (B2, J2, H2, W2), dtype=jnp.float32)
    t2 = jax.random.normal(k2, (B2, J2, H2, W2), dtype=jnp.float32)
    w2 = jax.random.uniform(k3, (B2, J2), dtype=jnp.float32)
    loss2 = jax.block_until_ready(
        joints_mse_loss(o2, t2, w2, use_target_weight=True, force_pallas=True))
    ref2 = _reference_loss(o2, t2, w2, use_target_weight=True)
    assert jnp.allclose(loss2, ref2, rtol=1e-5, atol=1e-6), (float(loss2), float(ref2))

    # Extra check: multi-chunk lane loop + sublane-group fold (tr > 8) +
    # multi-tile parallel grid.
    B3, J3, H3, W3 = 4, 16, 32, 32
    o3 = jax.random.normal(k1, (B3, J3, H3, W3), dtype=jnp.float32)
    t3 = jax.random.normal(k2, (B3, J3, H3, W3), dtype=jnp.float32)
    w3 = jax.random.uniform(k3, (B3, J3), dtype=jnp.float32)
    loss3 = jax.block_until_ready(
        joints_mse_loss(o3, t3, w3, use_target_weight=True, force_pallas=True))
    ref3 = _reference_loss(o3, t3, w3, use_target_weight=True)
    assert jnp.allclose(loss3, ref3, rtol=1e-5, atol=1e-6), (float(loss3), float(ref3))

    # Mirror the module's forward-pass prints.
    print(f"Batch Loss: {float(loss)}")
    print(f"Batch Size: {B}")
    print(f"Number of Joints: {J}")
    print("KERNEL_OK")
</pallas_src>

<mosaic_0001>
module attributes {stable_mosaic.version = 11 : i64} {
  func.func @_joints_mse_partial_kernel(%arg0: i32, %arg1: memref<8x256xf32, #tpu.memory_space<vmem>>, %arg2: memref<8x256xf32, #tpu.memory_space<vmem>>, %arg3: memref<8x1xf32, #tpu.memory_space<vmem>>, %arg4: memref<8x128xf32, #tpu.memory_space<vmem>>) attributes {dimension_semantics = [#tpu.dimension_semantics<parallel>], iteration_bounds = array<i64: 1>, scalar_prefetch = 0 : i64, scratch_operands = 0 : i64, tpu.core_type = #tpu.core_type<tc>, window_params = [{transform_indices = @transform_0, window_bounds = array<i64: 8, 256>}, {transform_indices = @transform_1, window_bounds = array<i64: 8, 256>}, {transform_indices = @transform_2, window_bounds = array<i64: 8, 1>}, {transform_indices = @transform_3, window_bounds = array<i64: 8, 128>}]} {
    %cst = arith.constant 0.000000e+00 : f32
    %0 = vector.broadcast %cst : f32 to vector<8x128xf32>
    %c0 = arith.constant 0 : index
    %c0_0 = arith.constant 0 : index
    %1 = vector.load %arg1[%c0, %c0_0] : memref<8x256xf32, #tpu.memory_space<vmem>>, vector<8x128xf32>
    %c0_1 = arith.constant 0 : index
    %c0_2 = arith.constant 0 : index
    %2 = vector.load %arg2[%c0_1, %c0_2] : memref<8x256xf32, #tpu.memory_space<vmem>>, vector<8x128xf32>
    %3 = arith.subf %1, %2 : vector<8x128xf32>
    %4 = arith.mulf %3, %3 : vector<8x128xf32>
    %5 = arith.addf %0, %4 : vector<8x128xf32>
    %c0_3 = arith.constant 0 : index
    %c128 = arith.constant 128 : index
    %6 = vector.load %arg1[%c0_3, %c128] : memref<8x256xf32, #tpu.memory_space<vmem>>, vector<8x128xf32>
    %c0_4 = arith.constant 0 : index
    %c128_5 = arith.constant 128 : index
    %7 = vector.load %arg2[%c0_4, %c128_5] : memref<8x256xf32, #tpu.memory_space<vmem>>, vector<8x128xf32>
    %8 = arith.subf %6, %7 : vector<8x128xf32>
    %9 = arith.mulf %8, %8 : vector<8x128xf32>
    %10 = arith.addf %5, %9 : vector<8x128xf32>
    %c0_6 = arith.constant 0 : index
    %c0_7 = arith.constant 0 : index
    %11 = vector.load %arg3[%c0_6, %c0_7] : memref<8x1xf32, #tpu.memory_space<vmem>>, vector<8x1xf32>
    %12 = arith.mulf %11, %11 : vector<8x1xf32>
    %13 = vector.broadcast %12 : vector<8x1xf32> to vector<8x128xf32>
    %14 = arith.mulf %10, %13 : vector<8x128xf32>
    %c0_8 = arith.constant 0 : index
    %c0_9 = arith.constant 0 : index
    %15 = vector.load %arg4[%c0_8, %c0_9] : memref<8x128xf32, #tpu.memory_space<vmem>>, vector<8x128xf32>
    tpu.vector_store %arg4[%c0_8, %c0_9], %14 {strides = array<i32>} : memref<8x128xf32, #tpu.memory_space<vmem>>, vector<8x128xf32>,
    return
  }
  func.func @transform_0(%arg0: i32) -> (i32, i32) {
    %c0_i32 = arith.constant 0 : i32
    %c0_i32_0 = arith.constant 0 : i32
    return %arg0, %c0_i32 : i32, i32
  }
  func.func @transform_1(%arg0: i32) -> (i32, i32) {
    %c0_i32 = arith.constant 0 : i32
    %c0_i32_0 = arith.constant 0 : i32
    return %arg0, %c0_i32 : i32, i32
  }
  func.func @transform_2(%arg0: i32) -> (i32, i32) {
    %c0_i32 = arith.constant 0 : i32
    %c0_i32_0 = arith.constant 0 : i32
    return %arg0, %c0_i32 : i32, i32
  }
  func.func @transform_3(%arg0: i32) -> (i32, i32) {
    %c0_i32 = arith.constant 0 : i32
    %c0_i32_0 = arith.constant 0 : i32
    return %arg0, %c0_i32 : i32, i32
  }
}

</mosaic_0001>

<bundles_post_ra>
// kernel: tpu_custom_call.1
= control target key start
LH: loop header
LB: loop body
LE: loop exit
PB: predicated region body
PF: predicated region fallthrough
CT: control target
= control target key end

     0   :  { %8 = vsyncpa [#allocation3], 0  ;;  %s214_s0 = inlined_call_operand.hbm [shape: f32[8,256], index: 0, kind: input, shape index: {}]   ;;  %s215_s1 = inlined_call_operand.hbm [shape: f32[8,256], index: 1, kind: input, shape index: {}]   ;;  %s216_s2 = inlined_call_operand.vmem [shape: f32[8,1], index: 2, kind: input, shape index: {}]   ;;  %s217_s3 = inlined_call_operand.hbm [shape: f32[8,128], index: 3, kind: output, shape index: {}]  }
   0x1   :  { %9 = vsyncpa [#allocation6], 0 }
   0x2   :  { %10 = vsyncpa [#allocation4], 0  ;;  %s151_s12 = smov [#allocation2]   ;;  %s152_s14 = smov [#allocation5]  }
   0x3   :  { %s17_s13 = sshll.u32 %s151_s12, 4  ;;  %s27_s15 = sshll.u32 %s152_s14, 4  ;;  %s18_s13 = int_to_ptr.vmem [resolvable:$true] %s17_s13  ;;  %s28_s15 = int_to_ptr.vmem [resolvable:$true] %s27_s15 }
   0x4   :  { %s79_s18 = scalar_lea.hbm %s214_s0, 256 }
   0x5   :  { %p80_p0 = scmp.ne.s32.totalorder %s214_s0, %s79_s18  ;;  %p83_p1 = scmp.lt.u32.totalorder %s79_s18, %s214_s0 }
   0x7   :  { %p85_p2 = pnand %p83_p1, %p80_p0 }
   0x9   :  { %88 = shalt.err (!%p85_p2)
}
   0xa   :  { %s89_s23 = scalar_lea.vmem %s18_s13, 256  ;;  %p94_p4 = scmp.lt.s32.totalorder %s18_s13, %s18_s13 }
   0xb   :  { %p90_p3 = scmp.ne.s32.totalorder %s18_s13, %s89_s23  ;;  %p95_p5 = scmp.lt.s32.totalorder %s89_s23, %s89_s23 }
   0xd   :  { %p96_p6 = por %p95_p5, %p94_p4 }
   0xf   :  { %p97_p7 = pnand %p96_p6, %p90_p3 }
  0x11   :  { %100 = shalt.err (!%p97_p7)
}
  0x12   :  { %20 = dma.hbm_to_vmem [thread:$0]  %s214_s0, 256, %s18_s13, [#allocation3]  }
  0x13   :  { %s101_s28 = scalar_lea.hbm %s215_s1, 256 }
  0x14   :  { %p102_p8 = scmp.ne.s32.totalorder %s215_s1, %s101_s28  ;;  %p105_p9 = scmp.lt.u32.totalorder %s101_s28, %s215_s1 }
  0x16   :  { %p107_p10 = pnand %p105_p9, %p102_p8 }
  0x18   :  { %110 = shalt.err (!%p107_p10)
}
  0x19   :  { %s111_s6 = scalar_lea.vmem %s28_s15, 256  ;;  %p116_p12 = scmp.lt.s32.totalorder %s28_s15, %s28_s15 }
  0x1a   :  { %p112_p11 = scmp.ne.s32.totalorder %s28_s15, %s111_s6  ;;  %p117_p13 = scmp.lt.s32.totalorder %s111_s6, %s111_s6 }
  0x1c   :  { %p118_p0 = por %p117_p13, %p116_p12 }
  0x1e   :  { %p119_p1 = pnand %p118_p0, %p112_p11 }
  0x20   :  { %122 = shalt.err (!%p119_p1)
}
  0x21   :  { %30 = dma.hbm_to_vmem [thread:$0]  %s215_s1, 256, %s28_s15, [#allocation6]  }
  0x22   :  { %145 = dma.done.wait [#allocation3], 256  }
  0x23   :  { %146 = vsyncadd [#allocation3], 4294967040 }
  0x24   :  { %147 = dma.done.wait [#allocation6], 256  }
  0x25   :  { %148 = vsyncadd [#allocation6], 4294967040  ;;  %v153_v0 = vmov 0   ;;  %v49_v1 = vld [vmem:[%s216_s2] sm:$0xff]  ;;  %v40_v4 = vld [vmem:[#allocation5] sm:$0xff]  ;;  %s154_s1 = smov [#allocation7]  }
  0x26   :  { %78 = vset.pattern.permute.xlu0 %v153_v0  ;;  %v50_v2 = vmul.f32 %v49_v1, %v49_v1  ;;  %v39_v3 = vld [vmem:[#allocation2] sm:$0xff]  ;;  %v44_v5 = vld [vmem:[#allocation2 + $0x8] sm:$0xff]  ;;  %v45_v6 = vld [vmem:[#allocation5 + $0x8] sm:$0xff]  ;;  %s64_s10 = sshll.u32 %s154_s1, 4  ;;  %s65_s10 = int_to_ptr.vmem [resolvable:$true] %s64_s10 }
  0x27   :  { %v41_v7 = vsub.f32 %v39_v3, %v40_v4  ;;  %v46_v8 = vsub.f32 %v44_v5, %v45_v6  ;;  %s123_s11 = scalar_lea.vmem %s65_s10, 128  ;;  %p128_p3 = scmp.lt.s32.totalorder %s65_s10, %s65_s10 }
  0x28   :  { %53 = vperm.xlu0 %78, %v50_v2   ;;  %p124_p2 = scmp.ne.s32.totalorder %s65_s10, %s123_s11  ;;  %p129_p4 = scmp.lt.s32.totalorder %s123_s11, %s123_s11 }
  0x29   :  { %v42_v9 = vmul.f32 %v41_v7, %v41_v7  ;;  %v47_v10 = vmul.f32 %v46_v8, %v46_v8 }
  0x2a   :  { %p130_p5 = por %p129_p4, %p128_p3 }
  0x2b   :  { %v48_v11 = vadd.f32 %v47_v10, %v42_v9 }
  0x2c   :  { %p131_p6 = pnand %p130_p5, %p124_p2 }
  0xa7   :  { %v54_v12 = vpop.permute.xlu0 %53 }
  0xa8   :  { %v56_v13 = vmul.f32 %v54_v12, %v48_v11 }
  0xaa   :  { %57 = vst [vmem:[#allocation7] sm:$0xff] %v56_v13 }
  0xab   :  { %134 = shalt.err (!%p131_p6)
}
  0xac   :  { %s135_s13 = scalar_lea.hbm %s217_s3, 128 }
  0xad   :  { %p136_p7 = scmp.ne.s32.totalorder %s217_s3, %s135_s13  ;;  %p139_p8 = scmp.lt.u32.totalorder %s135_s13, %s217_s3 }
  0xaf   :  { %p141_p9 = pnand %p139_p8, %p136_p7 }
  0xb1   :  { %144 = shalt.err (!%p141_p9)
}
  0xb2   :  { %67 = dma.vmem_to_hbm [thread:$0]  %s65_s10, 128, %s217_s3, [#allocation4]  }
  0xb3   :  { %149 = dma.done.wait [#allocation4], 128  }
  0xb4   :  { %150 = vsyncadd [#allocation4], 4294967168 }
  0xb5   :  { %71 = vsyncpa [#allocation3], 1 }
  0xb6   :  { %72 = vsyncpa [#allocation6], 1 }
  0xb7   :  { %73 = vsyncpa [#allocation4], 1 }

</bundles_post_ra>
